<compile_context>
chip_gen: v7x
topology: tpu7x:2x2x1
jax: 0.10.0
libtpu: 0.0.40
codegen_flags: <defaults>
</compile_context>

<pallas_src>
import jax
import jax.numpy as jnp
from jax.experimental import pallas as pl
from jax.experimental.pallas import tpu as pltpu


def edit_encoder_kernel(ins_idx_ref, ins_keep_ref, del_idx_ref, del_keep_ref,
                        fused_ref, out_ref):
    V = fused_ref.shape[0]
    bt = ins_idx_ref.shape[0]

    fused = fused_ref[...]                                    # (V, E2), resident

    def masked_counts(idx_ref, keep_ref):
        idx = idx_ref[...]                                    # (bt, L) int32
        keep = keep_ref[...]                                  # (bt, L) f32 in {0,1}
        L = idx.shape[1]
        vocab_ids = jax.lax.broadcasted_iota(jnp.int32, (bt, L, V), 2)
        hit = idx[:, :, None] == vocab_ids                    # (bt, L, V) bool
        weighted = jnp.where(hit, keep[:, :, None], jnp.float32(0.0))
        return jnp.sum(weighted, axis=1)                      # (bt, V)

    c_ins = masked_counts(ins_idx_ref, ins_keep_ref)          # (bt, V)
    c_del = masked_counts(del_idx_ref, del_keep_ref)          # (bt, V)

    # Single MXU contraction: stack insert/delete counts along rows so the
    # fused table is pushed through the MXU once.
    counts = jnp.concatenate([c_ins, c_del], axis=0)          # (2*bt, V)
    proj = jnp.dot(counts, fused,
                   preferred_element_type=jnp.float32)        # (2*bt, E2)

    # One lane-dense (bt, E) store: [insert_set | delete_set] along lanes.
    out_ref[...] = jnp.concatenate([proj[:bt, :], proj[bt:, :]],
                                   axis=1).astype(out_ref.dtype)


def edit_encoder_forward(emb_table, w_prenoise_t, insert, insert_mask,
                         delete, delete_mask, *, batch_tile=256):
    """emb_table: (V, D), w_prenoise_t: (D, E2)  (transpose of the PyTorch
    nn.Linear weight), insert/delete: (B, L) int, masks: (B, L).
    Returns (B, 2*E2) float32 == torch.cat([insert_set, delete_set], 1)."""
    B, Li = insert.shape
    _, Ld = delete.shape
    V, D = emb_table.shape
    E2 = w_prenoise_t.shape[1]
    E = 2 * E2

    # Pre-fuse the prenoise projection into the embedding table (V, E2).
    # (Kept in f32 for bit-accuracy; casting `fused` to bf16 would use the
    # bf16-native MXU path on v6e/v7x if accuracy allows.)
    fused = jnp.dot(emb_table.astype(jnp.float32),
                    w_prenoise_t.astype(jnp.float32),
                    preferred_element_type=jnp.float32)

    # torch masked_fill_(mask == 0, 0) semantics -> binary keep weights.
    ins_keep = (insert_mask != 0).astype(jnp.float32)
    del_keep = (delete_mask != 0).astype(jnp.float32)
    ins_idx = insert.astype(jnp.int32)
    del_idx = delete.astype(jnp.int32)

    # Batch tiling: whole batch when small, otherwise multiple-of-8 tiles
    # (sublane constraint) with zero-padding of the tail tile.
    if B <= batch_tile:
        bt, Bp = B, B
    else:
        bt = batch_tile                       # multiple of 8
        Bp = pl.cdiv(B, bt) * bt
        pad = Bp - B
        if pad:
            ins_idx = jnp.pad(ins_idx, ((0, pad), (0, 0)))
            del_idx = jnp.pad(del_idx, ((0, pad), (0, 0)))
            ins_keep = jnp.pad(ins_keep, ((0, pad), (0, 0)))
            del_keep = jnp.pad(del_keep, ((0, pad), (0, 0)))

    grid = (Bp // bt,)

    out = pl.pallas_call(
        edit_encoder_kernel,
        out_shape=jax.ShapeDtypeStruct((Bp, E), jnp.float32),
        grid_spec=pltpu.PrefetchScalarGridSpec(
            num_scalar_prefetch=0,
            grid=grid,
            in_specs=[
                pl.BlockSpec((bt, Li), lambda i: (i, 0)),   # insert indices
                pl.BlockSpec((bt, Li), lambda i: (i, 0)),   # insert keep mask
                pl.BlockSpec((bt, Ld), lambda i: (i, 0)),   # delete indices
                pl.BlockSpec((bt, Ld), lambda i: (i, 0)),   # delete keep mask
                pl.BlockSpec((V, E2), lambda i: (0, 0)),    # fused table, resident
            ],
            out_specs=pl.BlockSpec((bt, E), lambda i: (i, 0)),
        ),
        compiler_params=pltpu.CompilerParams(
            dimension_semantics=("parallel",),              # megacore-split batch
            vmem_limit_bytes=32 * 1024 * 1024,              # safe on v5e/v6e/v7x
        ),
    )(ins_idx, ins_keep, del_idx, del_keep, fused)

    return out[:B]


def edit_encoder_reference(emb_table, w_prenoise_t, insert, insert_mask,
                           delete, delete_mask):
    ins_emb = jnp.take(emb_table, insert, axis=0)
    del_emb = jnp.take(emb_table, delete, axis=0)
    ins_sum = jnp.sum(ins_emb * (insert_mask != 0)[..., None], axis=1)
    del_sum = jnp.sum(del_emb * (delete_mask != 0)[..., None], axis=1)
    ins_set = ins_sum @ w_prenoise_t
    del_set = del_sum @ w_prenoise_t
    return jnp.concatenate([ins_set, del_set], axis=1)


if __name__ == "__main__":
    key = jax.random.PRNGKey(0)
    k_emb, k_w, k_ins, k_del, k_imask, k_dmask = jax.random.split(key, 6)

    # Small shapes consistent with the module.
    vocab = 50
    word_dim = 32          # embedding dim
    edit_dim = 128         # default edit_dim -> prenoise out = 64
    batch = 2
    ins_len = 8
    del_len = 8

    emb_table = jax.random.normal(k_emb, (vocab, word_dim), dtype=jnp.float32) * 0.1
    # torch nn.Linear(word_dim, edit_dim//2, bias=False).weight has shape
    # (edit_dim//2, word_dim); we keep its transpose (word_dim, edit_dim//2).
    w_prenoise_t = jax.random.normal(k_w, (word_dim, edit_dim // 2),
                                     dtype=jnp.float32) * 0.1

    insert = jax.random.randint(k_ins, (batch, ins_len), 0, vocab, dtype=jnp.int32)
    delete = jax.random.randint(k_del, (batch, del_len), 0, vocab, dtype=jnp.int32)
    insert_mask = (jax.random.uniform(k_imask, (batch, ins_len)) > 0.3).astype(jnp.float32)
    delete_mask = (jax.random.uniform(k_dmask, (batch, del_len)) > 0.3).astype(jnp.float32)

    out = edit_encoder_forward(emb_table, w_prenoise_t, insert, insert_mask,
                               delete, delete_mask)
    out = jax.block_until_ready(out)

    ref = edit_encoder_reference(emb_table, w_prenoise_t, insert, insert_mask,
                                 delete, delete_mask)
    assert out.shape == (batch, edit_dim)
    # Slightly looser tolerance: pre-fusing W into the table changes the
    # f32 summation order (mathematically identical).
    assert jnp.allclose(out, ref, atol=1e-4, rtol=1e-4), "mismatch vs reference"

    print("KERNEL_OK")
</pallas_src>

<mosaic_0001>
module attributes {stable_mosaic.version = 11 : i64} {
  func.func @edit_encoder_kernel(%arg0: i32, %arg1: memref<2x8xi32, #tpu.memory_space<vmem>>, %arg2: memref<2x8xf32, #tpu.memory_space<vmem>>, %arg3: memref<2x8xi32, #tpu.memory_space<vmem>>, %arg4: memref<2x8xf32, #tpu.memory_space<vmem>>, %arg5: memref<50x64xf32, #tpu.memory_space<vmem>>, %arg6: memref<2x128xf32, #tpu.memory_space<vmem>>) attributes {dimension_semantics = [#tpu.dimension_semantics<parallel>], iteration_bounds = array<i64: 1>, scalar_prefetch = 0 : i64, scratch_operands = 0 : i64, tpu.core_type = #tpu.core_type<tc>, window_params = [{transform_indices = @transform_0, window_bounds = array<i64: 2, 8>}, {transform_indices = @transform_1, window_bounds = array<i64: 2, 8>}, {transform_indices = @transform_2, window_bounds = array<i64: 2, 8>}, {transform_indices = @transform_3, window_bounds = array<i64: 2, 8>}, {pipeline_mode = #tpu.pipeline_mode<synchronous>, transform_indices = @transform_4, window_bounds = array<i64: 50, 64>}, {transform_indices = @transform_5, window_bounds = array<i64: 2, 128>}]} {
    %c0 = arith.constant 0 : index
    %c0_0 = arith.constant 0 : index
    %0 = vector.load %arg5[%c0, %c0_0] : memref<50x64xf32, #tpu.memory_space<vmem>>, vector<50x64xf32>
    %c0_1 = arith.constant 0 : index
    %c0_2 = arith.constant 0 : index
    %1 = vector.load %arg1[%c0_1, %c0_2] : memref<2x8xi32, #tpu.memory_space<vmem>>, vector<2x8xi32>
    %c0_3 = arith.constant 0 : index
    %c0_4 = arith.constant 0 : index
    %2 = vector.load %arg2[%c0_3, %c0_4] : memref<2x8xf32, #tpu.memory_space<vmem>>, vector<2x8xf32>
    %3 = tpu.iota {dimensions = array<i32: 2>} : vector<2x8x50xi32>
    %4 = vector.shape_cast %1 : vector<2x8xi32> to vector<2x8x1xi32>
    %5 = vector.broadcast %4 : vector<2x8x1xi32> to vector<2x8x50xi32>
    %6 = arith.cmpi eq, %5, %3 : vector<2x8x50xi32>
    %7 = vector.shape_cast %2 : vector<2x8xf32> to vector<2x8x1xf32>
    %cst = arith.constant 0.000000e+00 : f32
    %8 = vector.shape_cast %7 : vector<2x8x1xf32> to vector<2x8x1xf32>
    %9 = vector.broadcast %8 : vector<2x8x1xf32> to vector<2x8x50xf32>
    %10 = vector.broadcast %cst : f32 to vector<2x8x50xf32>
    %11 = arith.select %6, %9, %10 : vector<2x8x50xi1>, vector<2x8x50xf32>
    %cst_5 = arith.constant dense<0.000000e+00> : vector<2x50xf32>
    %12 = vector.multi_reduction <add>, %11, %cst_5 [1] : vector<2x8x50xf32> to vector<2x50xf32>
    %c0_6 = arith.constant 0 : index
    %c0_7 = arith.constant 0 : index
    %13 = vector.load %arg3[%c0_6, %c0_7] : memref<2x8xi32, #tpu.memory_space<vmem>>, vector<2x8xi32>
    %c0_8 = arith.constant 0 : index
    %c0_9 = arith.constant 0 : index
    %14 = vector.load %arg4[%c0_8, %c0_9] : memref<2x8xf32, #tpu.memory_space<vmem>>, vector<2x8xf32>
    %15 = tpu.iota {dimensions = array<i32: 2>} : vector<2x8x50xi32>
    %16 = vector.shape_cast %13 : vector<2x8xi32> to vector<2x8x1xi32>
    %17 = vector.broadcast %16 : vector<2x8x1xi32> to vector<2x8x50xi32>
    %18 = arith.cmpi eq, %17, %15 : vector<2x8x50xi32>
    %19 = vector.shape_cast %14 : vector<2x8xf32> to vector<2x8x1xf32>
    %cst_10 = arith.constant 0.000000e+00 : f32
    %20 = vector.shape_cast %19 : vector<2x8x1xf32> to vector<2x8x1xf32>
    %21 = vector.broadcast %20 : vector<2x8x1xf32> to vector<2x8x50xf32>
    %22 = vector.broadcast %cst_10 : f32 to vector<2x8x50xf32>
    %23 = arith.select %18, %21, %22 : vector<2x8x50xi1>, vector<2x8x50xf32>
    %cst_11 = arith.constant dense<0.000000e+00> : vector<2x50xf32>
    %24 = vector.multi_reduction <add>, %23, %cst_11 [1] : vector<2x8x50xf32> to vector<2x50xf32>
    %25 = tpu.concatenate %12, %24 in 0 : vector<2x50xf32>, vector<2x50xf32> -> vector<4x50xf32>
    %cst_12 = arith.constant dense<0.000000e+00> : vector<4x64xf32>
    %26 = tpu.matmul %25, %0, %cst_12 {dimension_numbers = #tpu.dot_dimension_numbers<[1], [0], [0], [1], [0, 0, 1, 1], [], []>} : vector<4x50xf32>, vector<50x64xf32>, vector<4x64xf32> -> vector<4x64xf32>
    %27 = vector.extract_strided_slice %26 {offsets = [0, 0], sizes = [2, 64], strides = [1, 1]} : vector<4x64xf32> to vector<2x64xf32>
    %28 = vector.extract_strided_slice %26 {offsets = [2, 0], sizes = [2, 64], strides = [1, 1]} : vector<4x64xf32> to vector<2x64xf32>
    %29 = tpu.concatenate %27, %28 in 1 : vector<2x64xf32>, vector<2x64xf32> -> vector<2x128xf32>
    %c0_13 = arith.constant 0 : index
    %c0_14 = arith.constant 0 : index
    %30 = vector.load %arg6[%c0_13, %c0_14] : memref<2x128xf32, #tpu.memory_space<vmem>>, vector<2x128xf32>
    tpu.vector_store %arg6[%c0_13, %c0_14], %29 {strides = array<i32>} : memref<2x128xf32, #tpu.memory_space<vmem>>, vector<2x128xf32>,
    return
  }
  func.func @transform_0(%arg0: i32) -> (i32, i32) {
    %c0_i32 = arith.constant 0 : i32
    %c0_i32_0 = arith.constant 0 : i32
    return %arg0, %c0_i32 : i32, i32
  }
  func.func @transform_1(%arg0: i32) -> (i32, i32) {
    %c0_i32 = arith.constant 0 : i32
    %c0_i32_0 = arith.constant 0 : i32
    return %arg0, %c0_i32 : i32, i32
  }
  func.func @transform_2(%arg0: i32) -> (i32, i32) {
    %c0_i32 = arith.constant 0 : i32
    %c0_i32_0 = arith.constant 0 : i32
    return %arg0, %c0_i32 : i32, i32
  }
  func.func @transform_3(%arg0: i32) -> (i32, i32) {
    %c0_i32 = arith.constant 0 : i32
    %c0_i32_0 = arith.constant 0 : i32
    return %arg0, %c0_i32 : i32, i32
  }
  func.func @transform_4(%arg0: i32) -> (i32, i32) {
    %c0_i32 = arith.constant 0 : i32
    %c0_i32_0 = arith.constant 0 : i32
    %c0_i32_1 = arith.constant 0 : i32
    return %c0_i32, %c0_i32_0 : i32, i32
  }
  func.func @transform_5(%arg0: i32) -> (i32, i32) {
    %c0_i32 = arith.constant 0 : i32
    %c0_i32_0 = arith.constant 0 : i32
    return %arg0, %c0_i32 : i32, i32
  }
}

</mosaic_0001>

<bundles_post_ra>
// kernel: tpu_custom_call.1
= control target key start
LH: loop header
LB: loop body
LE: loop exit
PB: predicated region body
PF: predicated region fallthrough
CT: control target
= control target key end

     0   :  { %10 = vsyncpa [#allocation3], 0  ;;  %s480_s0 = inlined_call_operand.hbm [shape: s32[2,8], index: 0, kind: input, shape index: {}]   ;;  %s481_s1 = inlined_call_operand.vmem [shape: f32[2,8], index: 1, kind: input, shape index: {}]   ;;  %s482_s2 = inlined_call_operand.vmem [shape: s32[2,8], index: 2, kind: input, shape index: {}]   ;;  %s483_s3 = inlined_call_operand.vmem [shape: f32[2,8], index: 3, kind: input, shape index: {}]   ;;  %s484_s4 = inlined_call_operand.hbm [shape: f32[50,64], index: 4, kind: input, shape index: {}]   ;;  %s485_s5 = inlined_call_operand.hbm [shape: f32[2,128], index: 5, kind: output, shape index: {}]  }
   0x1   :  { %11 = vsyncpa [#allocation6], 0 }
   0x2   :  { %12 = vsyncpa [#allocation4], 0  ;;  %s382_s18 = smov [#allocation2]   ;;  %s383_s20 = smov [#allocation5]  }
   0x3   :  { %s19_s19 = sshll.u32 %s382_s18, 4  ;;  %s34_s21 = sshll.u32 %s383_s20, 4  ;;  %s20_s19 = int_to_ptr.vmem [resolvable:$true] %s19_s19  ;;  %s421_s21 = int_to_ptr.vmem [resolvable:$true] %s34_s21 }
   0x4   :  { %s310_s24 = scalar_lea.hbm %s480_s0, 32 }
   0x5   :  { %p311_p0 = scmp.ne.s32.totalorder %s480_s0, %s310_s24  ;;  %p314_p1 = scmp.lt.u32.totalorder %s310_s24, %s480_s0 }
   0x7   :  { %p316_p2 = pnand %p314_p1, %p311_p0 }
   0x9   :  { %319 = shalt.err (!%p316_p2)
}
   0xa   :  { %s320_s29 = scalar_lea.vmem %s20_s19, 32  ;;  %p325_p4 = scmp.lt.s32.totalorder %s20_s19, %s20_s19 }
   0xb   :  { %p321_p3 = scmp.ne.s32.totalorder %s20_s19, %s320_s29  ;;  %p326_p5 = scmp.lt.s32.totalorder %s320_s29, %s320_s29 }
   0xd   :  { %p327_p6 = por %p326_p5, %p325_p4 }
   0xf   :  { %p328_p7 = pnand %p327_p6, %p321_p3 }
  0x11   :  { %331 = shalt.err (!%p328_p7)
}
  0x12   :  { %22 = dma.hbm_to_vmem [thread:$0]  %s480_s0, 32, %s20_s19, [#allocation3]  }
  0x13   :  { %s332_s9 = scalar_lea.hbm %s484_s4, 896 }
  0x14   :  { %p333_p8 = scmp.ne.s32.totalorder %s484_s4, %s332_s9  ;;  %p336_p9 = scmp.lt.u32.totalorder %s332_s9, %s484_s4 }
  0x16   :  { %p338_p10 = pnand %p336_p9, %p333_p8 }
  0x18   :  { %341 = shalt.err (!%p338_p10)
}
  0x19   :  { %s342_s14 = scalar_lea.vmem %s421_s21, 896  ;;  %p347_p12 = scmp.lt.s32.totalorder %s421_s21, %s421_s21 }
  0x1a   :  { %p343_p11 = scmp.ne.s32.totalorder %s421_s21, %s342_s14  ;;  %p348_p13 = scmp.lt.s32.totalorder %s342_s14, %s342_s14 }
  0x1c   :  { %p349_p0 = por %p348_p13, %p347_p12 }
  0x1e   :  { %p350_p1 = pnand %p349_p0, %p343_p11 }
  0x20   :  { %353 = shalt.err (!%p350_p1)
}
  0x21   :  { %s384_s0 = smov 128   ;;  %s385_s15 = smov 8  }
  0x22   :  { %40 = dma.hbm_to_vmem [thread:$0]  %s484_s4, 896, %s421_s21, [#allocation6], %s384_s0, %s384_s0, %s385_s15  }
  0x23   :  { %376 = dma.done.wait [#allocation3], 32  }
  0x24   :  { %377 = vsyncadd [#allocation3], 4294967264 }
  0x25   :  { %378 = dma.done.wait [#allocation6], 896  }
  0x26   :  { %379 = vsyncadd [#allocation6], 4294966400  ;;  %v56_v0 = vlaneseq  ;;  %v105_v4 = vld [vmem:[%s482_s2] sm:$0x3]  ;;  %v47_v8 = vld [vmem:[#allocation5] sm:$0xff]  ;;  %v386_v14 = vmov 0.0|0.0  }
  0x27   :  { %v54_v5 = vld [vmem:[#allocation2] sm:$0x3]  ;;  %v48_v9 = vld [vmem:[#allocation5 + $0x8] sm:$0xff]  ;;  %292 = vmatprep.subr.bf16.mxu0 %v386_v14  ;;  %v49_v15 = vld [vmem:[#allocation5 + $0x10] sm:$0xff]  ;;  %vm163_vm0 = vcmask 1041408   ;;  %v387_v27 = vmov 0.0  }
  0x28   :  { %v59_v1 = vshrl.u32 %v56_v0, 7  ;;  %v293_v12 = vpack.c.bf16 %v48_v9, %v47_v8  ;;  %v55_v13 = vld [vmem:[%s481_s1] sm:$0x3]  ;;  %v51_v21 = vld [vmem:[#allocation5 + $0x20] sm:$0xff]  ;;  %v52_v22 = vld [vmem:[#allocation5 + $0x28] sm:$0xff]  ;;  %vm388_vm1 = vmmov 0  }
  0x29   :  { %v50_v16 = vld [vmem:[#allocation5 + $0x18] sm:$0xff]  ;;  %v299_v25 = vpack.c.bf16 %v52_v22, %v51_v21  ;;  %v53_v26 = vld [vmem:[#allocation5 + $0x30] sm:$0x3]  ;;  %289 = vmatprep.mubr.msk.f32.mxu0 %vm388_vm1, %v387_v27  ;;  %v57_v30 = vand.u32 127, %v56_v0  ;;  %vm90_vm2 = vcmask 408576   ;;  %vm155_vm7 = vcmask 1041409  }
  0x2a   :  { %v60_v2 = vsub.s32 0, %v59_v1  ;;  %v67_v3 = vsub.s32 1, %v59_v1  ;;  %294 = vmatpush3.bf16.msra.mxu0 %v293_v12  ;;  %v296_v19 = vpack.c.bf16 %v50_v16, %v49_v15  ;;  %v106_v20 = vld [vmem:[%s483_s3] sm:$0x3]  ;;  %vm160_vm8 = vcmask 1043459   ;;  %s389_s1 = smov 64  }
  0x2b   :  { %295 = vmatprep.subr.bf16.mxu0 %v386_v14  ;;  %s390_s3 = smov [#allocation7]   ;;  %vm246_vm9 = vcmask 523264  }
  0x2c   :  { %v110_v6 = vrot.slane %v105_v4, %v60_v2  ;;  %v61_v7 = vrot.slane %v54_v5, %v60_v2  ;;  %v117_v10 = vrot.slane %v105_v4, %v67_v3  ;;  %v68_v11 = vrot.slane %v54_v5, %v67_v3  ;;  %s255_s22 = sshll.u32 %s390_s3, 4  ;;  %s256_s22 = int_to_ptr.vmem [resolvable:$true] %s255_s22 }
  0x2d   :  { %v84_v17 = vrot.slane %v55_v13, %v67_v3  ;;  %v77_v18 = vrot.slane %v55_v13, %v60_v2  ;;  %v133_v23 = vrot.slane %v106_v20, %v67_v3  ;;  %v126_v24 = vrot.slane %v106_v20, %v60_v2  ;;  %s354_s23 = scalar_lea.vmem %s256_s22, 32  ;;  %p359_p3 = scmp.lt.s32.totalorder %s256_s22, %s256_s22 }
  0x2e   :  { %112 = vbcast.lane.b32.xlu1 %v110_v6, 256  ;;  %63 = vbcast.lane.b32.xlu0 %v61_v7, 256  ;;  %p355_p2 = scmp.ne.s32.totalorder %s256_s22, %s354_s23  ;;  %p360_p4 = scmp.lt.s32.totalorder %s354_s23, %s354_s23 }
  0x2f   :  { %297 = vmatpush3.bf16.msra.mxu0 %v296_v19 }
  0x30   :  { %298 = vmatprep.subr.bf16.mxu0 %v386_v14  ;;  %p361_p5 = por %p360_p4, %p359_p3 }
  0x32   :  { %119 = vbcast.lane.b32.xlu1 %v117_v10, 256  ;;  %70 = vbcast.lane.b32.xlu0 %v68_v11, 256  ;;  %p362_p6 = pnand %p361_p5, %p355_p2 }
  0x33   :  { %300 = vmatpush3.bf16.msra.mxu0 %v299_v25 }
  0x34   :  { %287 = vmatprep.subr.mxu0 %v387_v27 }
  0x36   :  { %86 = vbcast.lane.b32.xlu1 %v84_v17, 256  ;;  %79 = vbcast.lane.b32.xlu0 %v77_v18, 256 }
  0x37   :  { %288 = vmatpush3.msk.msra.mxu0 %vm163_vm0, %v53_v26 }
  0x3a   :  { %135 = vbcast.lane.b32.xlu1 %v133_v23, 256  ;;  %128 = vbcast.lane.b32.xlu0 %v126_v24, 256 }
  0xa0   :  { %v113_v28 = vpop.permute.xlu1 %112  ;;  %v64_v29 = vpop.permute.xlu0 %63 }
  0xa1   :  { %vm72_vm3 = vcmp.eq.s32.totalorder %v64_v29, %v57_v30  ;;  %vm121_vm5 = vcmp.eq.s32.totalorder %v113_v28, %v57_v30 }
  0xa4   :  { %v120_v31 = vpop.permute.xlu1 %119  ;;  %v71_v32 = vpop.permute.xlu0 %70 }
  0xa5   :  { %vm73_vm4 = vcmp.eq.s32.totalorder %v71_v32, %v57_v30  ;;  %vm122_vm6 = vcmp.eq.s32.totalorder %v120_v31, %v57_v30 }
  0xa8   :  { %v87_v33 = vpop.permute.xlu1 %86  ;;  %v80_v34 = vpop.permute.xlu0 %79 }
  0xa9   :  { %v89_v35 = vsel %vm73_vm4, %v87_v33, 0.0  ;;  %v88_v36 = vsel %vm72_vm3, %v80_v34, 0.0 }
  0xaa   :  { %v98_v37 = vsel %vm90_vm2, %v89_v35, 0.0  ;;  %v91_v38 = vsel %vm90_vm2, %v88_v36, 0.0 }
  0xab   :  { %v99_v39 = vrot.slane %v98_v37, 4  ;;  %v92_v40 = vrot.slane %v91_v38, 4 }
  0xac   :  { %v136_v41 = vpop.permute.xlu1 %135  ;;  %v129_v42 = vpop.permute.xlu0 %128 }
  0xad   :  { %v100_v43 = vadd.f32 %v99_v39, %v98_v37  ;;  %v93_v44 = vadd.f32 %v92_v40, %v91_v38  ;;  %v138_v45 = vsel %vm122_vm6, %v136_v41, 0.0  ;;  %v137_v46 = vsel %vm121_vm5, %v129_v42, 0.0 }
  0xae   :  { %v146_v47 = vsel %vm90_vm2, %v138_v45, 0.0  ;;  %v139_v48 = vsel %vm90_vm2, %v137_v46, 0.0 }
  0xaf   :  { %v101_v49 = vrot.slane %v100_v43, 2  ;;  %v94_v50 = vrot.slane %v93_v44, 2  ;;  %v147_v51 = vrot.slane %v146_v47, 4  ;;  %v140_v52 = vrot.slane %v139_v48, 4 }
  0xb1   :  { %v102_v53 = vadd.f32 %v101_v49, %v100_v43  ;;  %v95_v54 = vadd.f32 %v94_v50, %v93_v44  ;;  %v148_v55 = vadd.f32 %v147_v51, %v146_v47  ;;  %v141_v56 = vadd.f32 %v140_v52, %v139_v48 }
  0xb3   :  { %v103_v57 = vrot.slane %v102_v53, 1  ;;  %v96_v58 = vrot.slane %v95_v54, 1  ;;  %v149_v59 = vrot.slane %v148_v55, 2  ;;  %v142_v60 = vrot.slane %v141_v56, 2 }
  0xb5   :  { %v150_v61 = vadd.f32 %v149_v59, %v148_v55  ;;  %v143_v62 = vadd.f32 %v142_v60, %v141_v56  ;;  %v104_v63 = vadd.f32 %v103_v57, %v102_v53  ;;  %v97_v0 = vadd.f32 %v96_v58, %v95_v54 }
  0xb7   :  { %v151_v1 = vrot.slane %v150_v61, 1  ;;  %v144_v2 = vrot.slane %v143_v62, 1  ;;  %v156_v5 = vsel %vm155_vm7, %v104_v63, %v97_v0 }
  0xb9   :  { %v152_v3 = vadd.f32 %v151_v1, %v150_v61  ;;  %v145_v4 = vadd.f32 %v144_v2, %v143_v62 }
  0xbb   :  { %v161_v6 = vsel %vm160_vm8, %v152_v3, %v145_v4 }
  0xbc   :  { %v164_v7 = vsel %vm163_vm0, %v156_v5, %v161_v6 }
  0xbd   :  { %290 = vmatmul.mubr.msk.f32.vlgmr.msra.gmra.mrb[0].mxu0 %vm90_vm2, %v164_v7 }
 0x190   :  { %v237_v8 = vpop.f32.mrb[0].mxu0 }
 0x191   :  { %v242_v9 = vrot.slane %v237_v8, 2  ;;  %v291_v10 = vpop.f32.mrb[1].mxu0 }
 0x193   :  { %243 = vrot.lane.b32.xlu0 %v242_v9, %s389_s1 }
 0x205   :  { %v244_v11 = vpop.permute.xlu0 %243 }
 0x206   :  { %v247_v12 = vsel %vm246_vm9, %v237_v8, %v244_v11 }
 0x207   :  { %248 = vst [vmem:[#allocation7] sm:$0x3] %v247_v12 }
 0x208   :  { %365 = shalt.err (!%p362_p6)
}
 0x209   :  { %s366_s26 = scalar_lea.hbm %s485_s5, 32 }
 0x20a   :  { %p367_p7 = scmp.ne.s32.totalorder %s485_s5, %s366_s26  ;;  %p370_p8 = scmp.lt.u32.totalorder %s366_s26, %s485_s5 }
 0x20c   :  { %p372_p9 = pnand %p370_p8, %p367_p7 }
 0x20e   :  { %375 = shalt.err (!%p372_p9)
}
 0x20f   :  { %258 = dma.vmem_to_hbm [thread:$0]  %s256_s22, 32, %s485_s5, [#allocation4]  }
 0x210   :  { %380 = dma.done.wait [#allocation4], 32  }
 0x211   :  { %381 = vsyncadd [#allocation4], 4294967264 }
 0x212   :  { %262 = vsyncpa [#allocation3], 1 }
 0x213   :  { %263 = vsyncpa [#allocation6], 1 }
 0x214   :  { %264 = vsyncpa [#allocation4], 1 }

</bundles_post_ra>
